<compile_context>
chip_gen: v6e
topology: v6e:2x2x1
jax: 0.10.0
libtpu: 0.0.40
codegen_flags: <defaults>
</compile_context>

<pallas_src>
import jax
import jax.numpy as jnp
from jax.experimental import pallas as pl
from jax.experimental.pallas import tpu as pltpu


# ----------------------------- Pallas kernel -------------------------------

def make_expert_kernel(scaling: float, inter_dim: int, compute_dtype):
    def expert_kernel(counts_ref,                      # scalar prefetch (SMEM): (n_tiles, E)
                      x_ref, xa_ref, wgu_ref, wd_ref,  # inputs
                      bgu_ref, ad_ref, bd_ref, rw_ref,
                      out_ref,                         # output (TM, H) in input dtype
                      acc_ref):                        # fp32 VMEM scratch (TM, H)
        t = pl.program_id(0)
        e = pl.program_id(1)
        n_e = pl.num_programs(1)

        @pl.when(e == 0)
        def _init():
            acc_ref[...] = jnp.zeros_like(acc_ref)

        # Skip experts that got no tokens in this token tile (their routing
        # weights are all zero, so skipping is exact).
        @pl.when(counts_ref[t, e] > 0)
        def _body():
            x = x_ref[...]                                            # (TM, H)

            # fused gate|up: base (H, 2I) + LoRA-B (block-diag (2r, 2I));
            # the LoRA-A projection xa (TM, 2r) was hoisted out of the expert loop.
            gu = jnp.dot(x, wgu_ref[...], preferred_element_type=jnp.float32)
            gu = gu + scaling * jnp.dot(xa_ref[0], bgu_ref[0],
                                        preferred_element_type=jnp.float32)
            gate = gu[:, :inter_dim]
            up = gu[:, inter_dim:]

            # act_fn (llama -> SiLU) * up, in fp32 on the VPU/EUP
            h32 = jax.nn.silu(gate) * up                              # (TM, I) fp32
            h = h32.astype(compute_dtype)                             # back to MXU dtype

            # down_proj: base + this expert's LoRA
            down = jnp.dot(h, wd_ref[...], preferred_element_type=jnp.float32)
            ha = jnp.dot(h, ad_ref[0], preferred_element_type=jnp.float32)
            down = down + scaling * jnp.dot(ha.astype(compute_dtype), bd_ref[0],
                                            preferred_element_type=jnp.float32)

            # weighted accumulation == torch's index_add_ with routing weights
            acc_ref[...] += rw_ref[0] * down                          # rw_ref[0]: (TM, 1)

        @pl.when(e == n_e - 1)
        def _finalize():
            out_ref[...] = acc_ref[...].astype(out_ref.dtype)

    return expert_kernel


# -------------------------- parameter packing ------------------------------

def pack_mixlora_params(params):
    """Pre-transpose / fuse weights ONCE (parameter-load time, not per forward)."""
    wg, wu, wd = params["wg"], params["wu"], params["wd"]      # (I,H), (I,H), (H,I)
    ag, bg = params["ag"], params["bg"]                        # (E,r,H), (E,I,r)
    au, bu = params["au"], params["bu"]                        # (E,r,H), (E,I,r)
    ad, bd = params["ad"], params["bd"]                        # (E,r,I), (E,H,r)
    E, r, _ = ag.shape
    I = wg.shape[0]
    dt = wg.dtype

    wgu_t = jnp.concatenate([wg.T, wu.T], axis=1)              # (H, 2I)  [gate | up]
    wd_t = wd.T                                                # (I, H)

    # fused LoRA-A for gate|up: (E, H, 2r)
    a_gu = jnp.concatenate([jnp.transpose(ag, (0, 2, 1)),
                            jnp.transpose(au, (0, 2, 1))], axis=2)
    # block-diagonal fused LoRA-B for gate|up: (E, 2r, 2I)
    bg_t = jnp.transpose(bg, (0, 2, 1))                        # (E, r, I)
    bu_t = jnp.transpose(bu, (0, 2, 1))                        # (E, r, I)
    zeros = jnp.zeros((E, r, I), dt)
    b_gu = jnp.concatenate([jnp.concatenate([bg_t, zeros], axis=2),
                            jnp.concatenate([zeros, bu_t], axis=2)], axis=1)

    ad_t = jnp.transpose(ad, (0, 2, 1))                        # (E, I, r)
    bd_t = jnp.transpose(bd, (0, 2, 1))                        # (E, r, H)

    return {"router": params["router"], "wgu": wgu_t, "wd": wd_t,
            "a_gu": a_gu, "b_gu": b_gu, "ad": ad_t, "bd": bd_t}


# ------------------------------ JAX wrapper --------------------------------

def mixlora_moe_forward(hidden_states, packed, *, num_experts, top_k, scaling,
                        model_scoping=False, token_tile=256):
    B, S, H = hidden_states.shape
    E = num_experts
    two_i = packed["wgu"].shape[1]
    I = two_i // 2
    two_r = packed["a_gu"].shape[2]
    r = two_r // 2
    input_dtype = hidden_states.dtype
    compute_dtype = packed["wgu"].dtype          # == module's self.dtype_

    if model_scoping:
        system_prefix_length = 20
        mask = (jnp.arange(S) < system_prefix_length).astype(hidden_states.dtype)
        hidden_states = hidden_states * mask[None, :, None]

    x = hidden_states.reshape(-1, H).astype(compute_dtype)     # (T, H) in compute dtype
    T = x.shape[0]

    # ---- token tiling / padding -------------------------------------------
    t8 = ((T + 7) // 8) * 8
    TM = min(((token_tile + 7) // 8) * 8, t8)
    T_pad = ((T + TM - 1) // TM) * TM
    if T_pad != T:
        x = jnp.pad(x, ((0, T_pad - T), (0, 0)))
    n_tiles = T_pad // TM

    # ---- router: tiny FLOPs, E-wide output -> plain XLA --------------------
    logits = jnp.dot(x, packed["router"].T.astype(compute_dtype),
                     precision="highest").astype(jnp.float32)
    probs = jax.nn.softmax(logits, axis=-1)
    routing_weights, selected = jax.lax.top_k(probs, top_k)             # (T_pad, k)
    routing_weights = routing_weights / jnp.sum(routing_weights, axis=-1, keepdims=True)
    one_hot = jax.nn.one_hot(selected, E, dtype=jnp.float32)            # (T_pad, k, E)
    rw_te = jnp.einsum("tk,tke->te", routing_weights, one_hot)          # (T_pad, E)
    valid = (jnp.arange(T_pad) < T).astype(jnp.float32)
    rw_te = rw_te * valid[:, None]                                      # zero out padding
    rw = jnp.transpose(rw_te)[:, :, None]                               # (E, T_pad, 1)

    # per-(tile, expert) routed-token counts, scalar-prefetched to SMEM so the
    # kernel can skip experts with no work in a tile.
    counts = (rw_te.reshape(n_tiles, TM, E) > 0).sum(axis=1).astype(jnp.int32)

    # ---- hoisted LoRA-A projections for gate|up: one lane-dense matmul -----
    xa = jnp.einsum("th,ehr->etr", x, packed["a_gu"],
                    precision="highest").astype(compute_dtype)          # (E, T_pad, 2r)

    out = pl.pallas_call(
        make_expert_kernel(float(scaling), I, compute_dtype),
        out_shape=jax.ShapeDtypeStruct((T_pad, H), input_dtype),
        grid_spec=pltpu.PrefetchScalarGridSpec(
            num_scalar_prefetch=1,
            grid=(n_tiles, E),
            in_specs=[
                pl.BlockSpec((TM, H), lambda t, e, c: (t, 0)),             # x
                pl.BlockSpec((1, TM, two_r), lambda t, e, c: (e, t, 0)),   # xa (hoisted A)
                pl.BlockSpec((H, two_i), lambda t, e, c: (0, 0)),          # wgu (fused base)
                pl.BlockSpec((I, H), lambda t, e, c: (0, 0)),              # wd
                pl.BlockSpec((1, two_r, two_i), lambda t, e, c: (e, 0, 0)),  # b_gu (fused B)
                pl.BlockSpec((1, I, r), lambda t, e, c: (e, 0, 0)),        # ad
                pl.BlockSpec((1, r, H), lambda t, e, c: (e, 0, 0)),        # bd
                pl.BlockSpec((1, TM, 1), lambda t, e, c: (e, t, 0)),       # routing weights
            ],
            out_specs=pl.BlockSpec((TM, H), lambda t, e, c: (t, 0)),       # revisited over e
            scratch_shapes=[pltpu.VMEM((TM, H), jnp.float32)],             # fp32 accumulator
        ),
        compiler_params=pltpu.CompilerParams(
            dimension_semantics=("parallel", "arbitrary"),
            vmem_limit_bytes=64 * 1024 * 1024),
    )(counts, x, xa, packed["wgu"], packed["wd"], packed["b_gu"],
      packed["ad"], packed["bd"], rw)

    return out[:T].reshape(B, S, H).astype(input_dtype)


# ----------------------------- pure-JAX reference ---------------------------

def mixlora_moe_reference(hidden_states, params, *, num_experts, top_k,
                          scaling, model_scoping=False):
    B, S, H = hidden_states.shape
    if model_scoping:
        mask = (jnp.arange(S) < 20).astype(hidden_states.dtype)
        hidden_states = hidden_states * mask[None, :, None]
    x = hidden_states.reshape(-1, H).astype(jnp.float32)
    mm = lambda a, b: jnp.dot(a, b, precision="highest")
    logits = mm(x, params["router"].T)
    probs = jax.nn.softmax(logits, axis=-1)
    rw, sel = jax.lax.top_k(probs, top_k)
    rw = rw / jnp.sum(rw, axis=-1, keepdims=True)
    out = jnp.zeros_like(x)
    for e in range(num_experts):
        we = jnp.sum(rw * (sel == e).astype(rw.dtype), axis=-1)              # (T,)
        gate = mm(x, params["wg"].T) + scaling * mm(mm(x, params["ag"][e].T), params["bg"][e].T)
        up = mm(x, params["wu"].T) + scaling * mm(mm(x, params["au"][e].T), params["bu"][e].T)
        h = jax.nn.silu(gate) * up
        down = mm(h, params["wd"].T) + scaling * mm(mm(h, params["ad"][e].T), params["bd"][e].T)
        out = out + we[:, None] * down
    return out.reshape(B, S, H).astype(hidden_states.dtype)


# ---------------------------------- main ------------------------------------

if __name__ == "__main__":
    # Small llama-style config
    B, S, H, I = 2, 8, 32, 64          # batch, seq, hidden, intermediate
    E, TOPK, R = 4, 2, 8               # num_experts, top_k, LoRA rank
    LORA_ALPHA = 16.0
    SCALING = LORA_ALPHA / R           # 2.0
    MODEL_SCOPING = False

    key = jax.random.PRNGKey(0)
    ks = jax.random.split(key, 11)

    params = {
        "router": jax.random.normal(ks[0], (E, H), jnp.float32) * 0.1,   # self.gate_
        "wg": jax.random.normal(ks[1], (I, H), jnp.float32) * 0.05,      # gate_proj.weight
        "wu": jax.random.normal(ks[2], (I, H), jnp.float32) * 0.05,      # up_proj.weight
        "wd": jax.random.normal(ks[3], (H, I), jnp.float32) * 0.05,      # down_proj.weight
        "ag": jax.random.normal(ks[4], (E, R, H), jnp.float32) * 0.05,   # LoRA A (gate)
        "bg": jax.random.normal(ks[5], (E, I, R), jnp.float32) * 0.05,   # LoRA B (gate)
        "au": jax.random.normal(ks[6], (E, R, H), jnp.float32) * 0.05,   # LoRA A (up)
        "bu": jax.random.normal(ks[7], (E, I, R), jnp.float32) * 0.05,   # LoRA B (up)
        "ad": jax.random.normal(ks[8], (E, R, I), jnp.float32) * 0.05,   # LoRA A (down)
        "bd": jax.random.normal(ks[9], (E, H, R), jnp.float32) * 0.05,   # LoRA B (down)
    }

    hidden = jax.random.normal(ks[10], (B, S, H), jnp.float32)

    # weight packing is done once, at parameter-load time
    packed = pack_mixlora_params(params)

    out = mixlora_moe_forward(hidden, packed, num_experts=E, top_k=TOPK,
                              scaling=SCALING, model_scoping=MODEL_SCOPING,
                              token_tile=256)
    out = jax.block_until_ready(out)

    ref = mixlora_moe_reference(hidden, params, num_experts=E, top_k=TOPK,
                                scaling=SCALING, model_scoping=MODEL_SCOPING)

    assert out.shape == (B, S, H) and out.dtype == hidden.dtype
    err = float(jnp.max(jnp.abs(out - ref)))
    assert jnp.allclose(out, ref, atol=1e-3, rtol=1e-3), err

    print("KERNEL_OK")
</pallas_src>

<mosaic_0001>
module attributes {stable_mosaic.version = 11 : i64} {
  func.func @expert_kernel(%arg0: i32, %arg1: i32, %arg2: memref<1x4xi32, #tpu.memory_space<smem>>, %arg3: memref<16x32xf32, #tpu.memory_space<vmem>>, %arg4: memref<1x16x16xf32, #tpu.memory_space<vmem>>, %arg5: memref<32x128xf32, #tpu.memory_space<vmem>>, %arg6: memref<64x32xf32, #tpu.memory_space<vmem>>, %arg7: memref<1x16x128xf32, #tpu.memory_space<vmem>>, %arg8: memref<1x64x8xf32, #tpu.memory_space<vmem>>, %arg9: memref<1x8x32xf32, #tpu.memory_space<vmem>>, %arg10: memref<1x16x1xf32, #tpu.memory_space<vmem>>, %arg11: memref<16x32xf32, #tpu.memory_space<vmem>>, %arg12: memref<16x32xf32, #tpu.memory_space<vmem>>) attributes {dimension_semantics = [#tpu.dimension_semantics<parallel>, #tpu.dimension_semantics<arbitrary>], iteration_bounds = array<i64: 1, 4>, scalar_prefetch = 1 : i64, scratch_operands = 1 : i64, tpu.core_type = #tpu.core_type<tc>, window_params = [{transform_indices = @transform_0, window_bounds = array<i64: 16, 32>}, {transform_indices = @transform_1, window_bounds = array<i64: 1, 16, 16>}, {pipeline_mode = #tpu.pipeline_mode<synchronous>, transform_indices = @transform_2, window_bounds = array<i64: 32, 128>}, {pipeline_mode = #tpu.pipeline_mode<synchronous>, transform_indices = @transform_3, window_bounds = array<i64: 64, 32>}, {transform_indices = @transform_4, window_bounds = array<i64: 1, 16, 128>}, {transform_indices = @transform_5, window_bounds = array<i64: 1, 64, 8>}, {transform_indices = @transform_6, window_bounds = array<i64: 1, 8, 32>}, {transform_indices = @transform_7, window_bounds = array<i64: 1, 16, 1>}, {transform_indices = @transform_8, window_bounds = array<i64: 16, 32>}]} {
    %c0_i32 = arith.constant 0 : i32
    %0 = arith.cmpi eq, %arg1, %c0_i32 : i32
    %1 = arith.extui %0 : i1 to i32
    %c0_i32_0 = arith.constant 0 : i32
    %2 = arith.cmpi ne, %1, %c0_i32_0 : i32
    scf.if %2 {
      %cst = arith.constant 0.000000e+00 : f32
      %12 = vector.broadcast %cst : f32 to vector<16x32xf32>
      %c0 = arith.constant 0 : index
      %c0_4 = arith.constant 0 : index
      %13 = vector.load %arg12[%c0, %c0_4] : memref<16x32xf32, #tpu.memory_space<vmem>>, vector<16x32xf32>
      tpu.vector_store %arg12[%c0, %c0_4], %12 {strides = array<i32>} : memref<16x32xf32, #tpu.memory_space<vmem>>, vector<16x32xf32>,
    } else {
    }
    %3 = arith.index_cast %arg0 : i32 to index
    %4 = arith.index_cast %arg1 : i32 to index
    %5 = memref.load %arg2[%3, %4] : memref<1x4xi32, #tpu.memory_space<smem>>
    %c0_i32_1 = arith.constant 0 : i32
    %6 = arith.cmpi sgt, %5, %c0_i32_1 : i32
    %7 = arith.extui %6 : i1 to i32
    %c0_i32_2 = arith.constant 0 : i32
    %8 = arith.cmpi ne, %7, %c0_i32_2 : i32
    scf.if %8 {
      %c0 = arith.constant 0 : index
      %c0_4 = arith.constant 0 : index
      %12 = vector.load %arg3[%c0, %c0_4] : memref<16x32xf32, #tpu.memory_space<vmem>>, vector<16x32xf32>
      %c0_5 = arith.constant 0 : index
      %c0_6 = arith.constant 0 : index
      %13 = vector.load %arg5[%c0_5, %c0_6] : memref<32x128xf32, #tpu.memory_space<vmem>>, vector<32x128xf32>
      %cst = arith.constant dense<0.000000e+00> : vector<16x128xf32>
      %14 = tpu.matmul %12, %13, %cst {dimension_numbers = #tpu.dot_dimension_numbers<[1], [0], [0], [1], [0, 0, 1, 1], [], []>} : vector<16x32xf32>, vector<32x128xf32>, vector<16x128xf32> -> vector<16x128xf32>
      %c0_7 = arith.constant 0 : index
      %c0_8 = arith.constant 0 : index
      %c0_9 = arith.constant 0 : index
      %15 = vector.load %arg4[%c0_7, %c0_8, %c0_9] : memref<1x16x16xf32, #tpu.memory_space<vmem>>, vector<1x16x16xf32>
      %16 = vector.shape_cast %15 : vector<1x16x16xf32> to vector<16x16xf32>
      %c0_10 = arith.constant 0 : index
      %c0_11 = arith.constant 0 : index
      %c0_12 = arith.constant 0 : index
      %17 = vector.load %arg7[%c0_10, %c0_11, %c0_12] : memref<1x16x128xf32, #tpu.memory_space<vmem>>, vector<1x16x128xf32>
      %18 = vector.shape_cast %17 : vector<1x16x128xf32> to vector<16x128xf32>
      %cst_13 = arith.constant dense<0.000000e+00> : vector<16x128xf32>
      %19 = tpu.matmul %16, %18, %cst_13 {dimension_numbers = #tpu.dot_dimension_numbers<[1], [0], [0], [1], [0, 0, 1, 1], [], []>} : vector<16x16xf32>, vector<16x128xf32>, vector<16x128xf32> -> vector<16x128xf32>
      %cst_14 = arith.constant 2.000000e+00 : f32
      %20 = vector.broadcast %cst_14 : f32 to vector<16x128xf32>
      %21 = arith.mulf %20, %19 : vector<16x128xf32>
      %22 = arith.addf %14, %21 : vector<16x128xf32>
      %23 = vector.extract_strided_slice %22 {offsets = [0, 0], sizes = [16, 64], strides = [1, 1]} : vector<16x128xf32> to vector<16x64xf32>
      %24 = vector.extract_strided_slice %22 {offsets = [0, 64], sizes = [16, 64], strides = [1, 1]} : vector<16x128xf32> to vector<16x64xf32>
      %25 = arith.negf %23 : vector<16x64xf32>
      %26 = math.exp %25 : vector<16x64xf32>
      %cst_15 = arith.constant 1.000000e+00 : f32
      %27 = vector.broadcast %cst_15 : f32 to vector<16x64xf32>
      %28 = arith.addf %27, %26 : vector<16x64xf32>
      %29 = arith.divf %27, %28 : vector<16x64xf32>
      %30 = arith.mulf %23, %29 : vector<16x64xf32>
      %31 = arith.mulf %30, %24 : vector<16x64xf32>
      %c0_16 = arith.constant 0 : index
      %c0_17 = arith.constant 0 : index
      %32 = vector.load %arg6[%c0_16, %c0_17] : memref<64x32xf32, #tpu.memory_space<vmem>>, vector<64x32xf32>
      %cst_18 = arith.constant dense<0.000000e+00> : vector<16x32xf32>
      %33 = tpu.matmul %31, %32, %cst_18 {dimension_numbers = #tpu.dot_dimension_numbers<[1], [0], [0], [1], [0, 0, 1, 1], [], []>} : vector<16x64xf32>, vector<64x32xf32>, vector<16x32xf32> -> vector<16x32xf32>
      %c0_19 = arith.constant 0 : index
      %c0_20 = arith.constant 0 : index
      %c0_21 = arith.constant 0 : index
      %34 = vector.load %arg8[%c0_19, %c0_20, %c0_21] : memref<1x64x8xf32, #tpu.memory_space<vmem>>, vector<1x64x8xf32>
      %35 = vector.shape_cast %34 : vector<1x64x8xf32> to vector<64x8xf32>
      %cst_22 = arith.constant dense<0.000000e+00> : vector<16x8xf32>
      %36 = tpu.matmul %31, %35, %cst_22 {dimension_numbers = #tpu.dot_dimension_numbers<[1], [0], [0], [1], [0, 0, 1, 1], [], []>} : vector<16x64xf32>, vector<64x8xf32>, vector<16x8xf32> -> vector<16x8xf32>
      %c0_23 = arith.constant 0 : index
      %c0_24 = arith.constant 0 : index
      %c0_25 = arith.constant 0 : index
      %37 = vector.load %arg9[%c0_23, %c0_24, %c0_25] : memref<1x8x32xf32, #tpu.memory_space<vmem>>, vector<1x8x32xf32>
      %38 = vector.shape_cast %37 : vector<1x8x32xf32> to vector<8x32xf32>
      %cst_26 = arith.constant dense<0.000000e+00> : vector<16x32xf32>
      %39 = tpu.matmul %36, %38, %cst_26 {dimension_numbers = #tpu.dot_dimension_numbers<[1], [0], [0], [1], [0, 0, 1, 1], [], []>} : vector<16x8xf32>, vector<8x32xf32>, vector<16x32xf32> -> vector<16x32xf32>
      %cst_27 = arith.constant 2.000000e+00 : f32
      %40 = vector.broadcast %cst_27 : f32 to vector<16x32xf32>
      %41 = arith.mulf %40, %39 : vector<16x32xf32>
      %42 = arith.addf %33, %41 : vector<16x32xf32>
      %c0_28 = arith.constant 0 : index
      %c0_29 = arith.constant 0 : index
      %43 = vector.load %arg12[%c0_28, %c0_29] : memref<16x32xf32, #tpu.memory_space<vmem>>, vector<16x32xf32>
      %c0_30 = arith.constant 0 : index
      %c0_31 = arith.constant 0 : index
      %c0_32 = arith.constant 0 : index
      %44 = vector.load %arg10[%c0_30, %c0_31, %c0_32] : memref<1x16x1xf32, #tpu.memory_space<vmem>>, vector<1x16x1xf32>
      %45 = vector.shape_cast %44 : vector<1x16x1xf32> to vector<16x1xf32>
      %46 = vector.broadcast %45 : vector<16x1xf32> to vector<16x32xf32>
      %47 = arith.mulf %46, %42 : vector<16x32xf32>
      %48 = arith.addf %43, %47 : vector<16x32xf32>
      %c0_33 = arith.constant 0 : index
      %c0_34 = arith.constant 0 : index
      %49 = vector.load %arg12[%c0_33, %c0_34] : memref<16x32xf32, #tpu.memory_space<vmem>>, vector<16x32xf32>
      tpu.vector_store %arg12[%c0_33, %c0_34], %48 {strides = array<i32>} : memref<16x32xf32, #tpu.memory_space<vmem>>, vector<16x32xf32>,
    } else {
    }
    %c3_i32 = arith.constant 3 : i32
    %9 = arith.cmpi eq, %arg1, %c3_i32 : i32
    %10 = arith.extui %9 : i1 to i32
    %c0_i32_3 = arith.constant 0 : i32
    %11 = arith.cmpi ne, %10, %c0_i32_3 : i32
    scf.if %11 {
      %c0 = arith.constant 0 : index
      %c0_4 = arith.constant 0 : index
      %12 = vector.load %arg12[%c0, %c0_4] : memref<16x32xf32, #tpu.memory_space<vmem>>, vector<16x32xf32>
      %c0_5 = arith.constant 0 : index
      %c0_6 = arith.constant 0 : index
      %13 = vector.load %arg11[%c0_5, %c0_6] : memref<16x32xf32, #tpu.memory_space<vmem>>, vector<16x32xf32>
      tpu.vector_store %arg11[%c0_5, %c0_6], %12 {strides = array<i32>} : memref<16x32xf32, #tpu.memory_space<vmem>>, vector<16x32xf32>,
    } else {
    }
    return
  }
  func.func @transform_0(%arg0: i32, %arg1: i32, %arg2: memref<1x4xi32, #tpu.memory_space<smem>>) -> (i32, i32) {
    %c0_i32 = arith.constant 0 : i32
    %c0_i32_0 = arith.constant 0 : i32
    return %arg0, %c0_i32 : i32, i32
  }
  func.func @transform_1(%arg0: i32, %arg1: i32, %arg2: memref<1x4xi32, #tpu.memory_space<smem>>) -> (i32, i32, i32) {
    %c0_i32 = arith.constant 0 : i32
    %c0_i32_0 = arith.constant 0 : i32
    return %arg1, %arg0, %c0_i32 : i32, i32, i32
  }
  func.func @transform_2(%arg0: i32, %arg1: i32, %arg2: memref<1x4xi32, #tpu.memory_space<smem>>) -> (i32, i32) {
    %c0_i32 = arith.constant 0 : i32
    %c0_i32_0 = arith.constant 0 : i32
    %c0_i32_1 = arith.constant 0 : i32
    return %c0_i32, %c0_i32_0 : i32, i32
  }
  func.func @transform_3(%arg0: i32, %arg1: i32, %arg2: memref<1x4xi32, #tpu.memory_space<smem>>) -> (i32, i32) {
    %c0_i32 = arith.constant 0 : i32
    %c0_i32_0 = arith.constant 0 : i32
    %c0_i32_1 = arith.constant 0 : i32
    return %c0_i32, %c0_i32_0 : i32, i32
  }
  func.func @transform_4(%arg0: i32, %arg1: i32, %arg2: memref<1x4xi32, #tpu.memory_space<smem>>) -> (i32, i32, i32) {
    %c0_i32 = arith.constant 0 : i32
    %c0_i32_0 = arith.constant 0 : i32
    %c0_i32_1 = arith.constant 0 : i32
    return %arg1, %c0_i32, %c0_i32_0 : i32, i32, i32
  }
  func.func @transform_5(%arg0: i32, %arg1: i32, %arg2: memref<1x4xi32, #tpu.memory_space<smem>>) -> (i32, i32, i32) {
    %c0_i32 = arith.constant 0 : i32
    %c0_i32_0 = arith.constant 0 : i32
    %c0_i32_1 = arith.constant 0 : i32
    return %arg1, %c0_i32, %c0_i32_0 : i32, i32, i32
  }
  func.func @transform_6(%arg0: i32, %arg1: i32, %arg2: memref<1x4xi32, #tpu.memory_space<smem>>) -> (i32, i32, i32) {
    %c0_i32 = arith.constant 0 : i32
    %c0_i32_0 = arith.constant 0 : i32
    %c0_i32_1 = arith.constant 0 : i32
    return %arg1, %c0_i32, %c0_i32_0 : i32, i32, i32
  }
  func.func @transform_7(%arg0: i32, %arg1: i32, %arg2: memref<1x4xi32, #tpu.memory_space<smem>>) -> (i32, i32, i32) {
    %c0_i32 = arith.constant 0 : i32
    %c0_i32_0 = arith.constant 0 : i32
    return %arg1, %arg0, %c0_i32 : i32, i32, i32
  }
  func.func @transform_8(%arg0: i32, %arg1: i32, %arg2: memref<1x4xi32, #tpu.memory_space<smem>>) -> (i32, i32) {
    %c0_i32 = arith.constant 0 : i32
    %c0_i32_0 = arith.constant 0 : i32
    return %arg0, %c0_i32 : i32, i32
  }
}

</mosaic_0001>

<bundles_post_ra>
// kernel: tpu_custom_call.1
= control target key start
LH: loop header
LB: loop body
LE: loop exit
PB: predicated region body
PF: predicated region fallthrough
CT: control target
= control target key end

     0   :  { %s1527_s0 = inlined_call_operand.vmem [shape: s32[1,4], index: 0, kind: input, shape index: {}]   ;;  %s1528_s1 = inlined_call_operand.vmem [shape: f32[16,32], index: 1, kind: input, shape index: {}]   ;;  %s1529_s2 = inlined_call_operand.vmem [shape: f32[4,16,16], index: 2, kind: input, shape index: {}]   ;;  %s1530_s3 = inlined_call_operand.vmem [shape: f32[32,128], index: 3, kind: input, shape index: {}]   ;;  %s1531_s4 = inlined_call_operand.vmem [shape: f32[64,32], index: 4, kind: input, shape index: {}]   ;;  %s1532_s5 = inlined_call_operand.vmem [shape: f32[4,16,128], index: 5, kind: input, shape index: {}]   ;;  %s1533_s6 = inlined_call_operand.vmem [shape: f32[4,64,8], index: 6, kind: input, shape index: {}]   ;;  %s1534_s7 = inlined_call_operand.vmem [shape: f32[4,8,32], index: 7, kind: input, shape index: {}]   ;;  %s1535_s8 = inlined_call_operand.vmem [shape: f32[4,16,1], index: 8, kind: input, shape index: {}]   ;;  %s1536_s9 = inlined_call_operand.hbm [shape: f32[16,32], index: 9, kind: output, shape index: {}]  }
   0x1   :  { %s14_s11 = sshll.u32 %s1527_s0, 4  ;;  %s15_s11 = int_to_ptr.vmem [resolvable:$true] %s14_s11 }
   0x2   :  { %s1270_s12 = scalar_lea.vmem %s15_s11, 16  ;;  %p1275_p1 = scmp.lt.s32.totalorder %s15_s11, %s15_s11 }
   0x3   :  { %p1271_p0 = scmp.ne.s32.totalorder %s15_s11, %s1270_s12  ;;  %p1276_p2 = scmp.lt.s32.totalorder %s1270_s12, %s1270_s12 }
   0x5   :  { %p1277_p3 = por %p1276_p2, %p1275_p1 }
   0x7   :  { %p1278_p4 = pnand %p1277_p3, %p1271_p0 }
   0x9   :  { %1281 = shalt.err (!%p1278_p4)  }
   0xa   :  { %s1336_s13 = smov [#allocation4]  }
   0xb   :  { %17 = dma.vmem_to_smem %s15_s11, 16, %s1336_s13, [#allocation3] }
   0xc   :  { %1318 = dma.done.wait [#allocation3], 16 }
   0xd   :  { %1319 = vsyncadd [#allocation3], 4294967280 }
   0xe   :  { %19 = sfence }
   0xf   :  { %20 = vsyncpa [#allocation6], 0  ;;  %s1396_s14 = smov 0   ;;  %s1398_s15 = smov 0  }
  0x10   :  { %s1400_s16 = smov 0  }
  0x11 LB: > { %s35_s17 = sadd.s32 1, %s1330_s15  ;;  %p1095_p6 = scmp.ge.s32.totalorder %s1334_s16, 1  ;;  %s1334_s16 = sphi %s1400_s16, %s26_s16   ;;  %s1330_s15 = sphi %s1398_s15, %s1540_s15   ;;  %s1326_s14 = sphi %s1396_s14, %s1539_s14  }
  0x12   : > { %p36_p5 = scmp.ge.s32.totalorder %s35_s17, 4  ;;  %p346_p7 = scmp.lt.s32.totalorder %s1334_s16, 5 }
  0x14   : > { %s1542_s17 = smov (%p36_p5, %s35_s17), 0  ;;  %p347_p8 = pnand %p1095_p6, %p346_p7 }
  0x15   : > { %p414_p9 = scmp.lt.s32.totalorder (!%p347_p8), %s1326_s14, 3  ;;  %p1105_p10 = scmp.ne.s32.totalorder (!%p347_p8), %s1326_s14, 0 }
  0x16   : > { %350 = sbr.rel (%p347_p8) target bundleno = 804 (0x324), region = 52 }
  0x1b   : > { %s415_s18 = scalar_select %p414_p9, %s1326_s14, 3 }
  0x1c   : > { %451 = sbr.rel (%p1105_p10) target bundleno = 35 (0x23), region = 56 }
  0x1d   : > { %s1125_s19 = sshll.u32 %s415_s18, 4  ;;  %s1127_s20 = sshll.u32 %s415_s18, 6 }
  0x1e   : > { %s421_s23 = scalar_lea.vmem %s1529_s2, %s1125_s19  ;;  %s427_s26 = scalar_lea.vmem %s1532_s5, %s1125_s19 }
  0x1f   : > { %s1428_s29 = scalar_lea.vmem %s1533_s6, %s1127_s20  ;;  %s1102_s30 = sshll.u32 %s415_s18, 3 }
  0x20   : > { %s1433_s12 = scalar_lea.vmem %s1534_s7, %s1102_s30  ;;  %s1438_s21 = scalar_lea.vmem %s1535_s8, %s1125_s19 }
  0x21   : > { %vm452_vm0 = vcmask 261120   ;;  %v1337_v0 = vmov 0.0  }
  0x22   : > { %453 = vst.msk [vmem:[#allocation2] sm:$0xff] %vm452_vm0, %v1337_v0  ;;  %454 = vst.msk [vmem:[#allocation2 + $0x8] sm:$0xff] %vm452_vm0, %v1337_v0 }
  0x23 PF: > { %s455_s18 = sshra.s32 %s1326_s14, 7  ;;  %s460_s20 = sand.u32 127, %s1326_s14 }
  0x24   : > { %s1106_s22 = sshll.u32 %s455_s18, 7 }
  0x25   : > { %s461_s24 = sadd.s32 %s1106_s22, %s460_s20 }
  0x26   : > { %s462_s25 = sld [smem:[#allocation4 + %s461_s24]] }
  0x2c   : > { %p1107_p11 = scmp.le.s32.totalorder %s462_s25, 0 }
  0x2d   : > { %s1338_s24 = smov (!%p1107_p11), 64  }
  0x2e   : > { %466 = sbr.rel (%p1107_p11) target bundleno = 779 (0x30b), region = 60 }
  0x33   : > { %v476_v1 = vld [vmem:[%s427_s26 + $0x8] sm:$0xff]  ;;  %v472_v2 = vld [vmem:[%s1530_s3 + $0x18] sm:$0xff]  ;;  %v475_v3 = vld [vmem:[%s427_s26] sm:$0xff]  ;;  %vm477_vm1 = vcmask 130048   ;;  %vm561_vm2 = vcmask 261120   ;;  %vm683_vm3 = vcmask 523264  }
  0x34   : > { %1162 = vmatprep.subr.mxu0 %v476_v1  ;;  %1169 = vmatprep.subr.mxu1 %v472_v2  ;;  %v471_v4 = vld [vmem:[%s1530_s3 + $0x10] sm:$0xff]  ;;  %v473_v5 = vld [vmem:[%s421_s23] sm:$0xff]  ;;  %v474_v6 = vld [vmem:[%s421_s23 + $0x8] sm:$0xff]  ;;  %v1339_v51 = vmov 0   ;;  %vm766_vm4 = vcmask 64512  }
  0x35   : > { %1163 = vmatpush3.msra.mxu0 %v476_v1  ;;  %1170 = vmatpush3.msra.mxu1 %v472_v2  ;;  %v470_v7 = vld [vmem:[%s1530_s3 + $0x8] sm:$0xff]  ;;  %v467_v8 = vld [vmem:[%s1528_s1] sm:$0xff]  ;;  %v682_v11 = vld [vmem:[%s1428_s29 + $0x38] sm:$0xff] }
  0x36   : > { %1164 = vmatprep.subr.mxu0 %v475_v3  ;;  %1171 = vmatprep.subr.mxu1 %v471_v4  ;;  %v469_v9 = vld [vmem:[%s1530_s3] sm:$0xff]  ;;  %v468_v10 = vld [vmem:[%s1528_s1 + $0x8] sm:$0xff]  ;;  %v674_v12 = vld [vmem:[%s1531_s4 + $0x38] sm:$0xff] }
  0x37   : > { %1165 = vmatpush3.msra.mxu0 %v475_v3  ;;  %1166 = vmatprep.mubr.msk.f32.mxu0 %vm477_vm1, %v473_v5  ;;  %v681_v13 = vld [vmem:[%s1428_s29 + $0x30] sm:$0xff]  ;;  %v680_v15 = vld [vmem:[%s1428_s29 + $0x28] sm:$0xff]  ;;  %v679_v17 = vld [vmem:[%s1428_s29 + $0x20] sm:$0xff] }
  0x38   : > { %1172 = vmatpush3.msra.mxu1 %v471_v4  ;;  %1167 = vmatmul.mubr.msk.f32.vlgmr.msra.gmra.mxu0 %vm477_vm1, %v474_v6  ;;  %v673_v14 = vld [vmem:[%s1531_s4 + $0x30] sm:$0xff]  ;;  %v672_v16 = vld [vmem:[%s1531_s4 + $0x28] sm:$0xff]  ;;  %v671_v18 = vld [vmem:[%s1531_s4 + $0x20] sm:$0xff] }
  0x39   : > { %1173 = vmatprep.subr.mxu1 %v470_v7  ;;  %1177 = vmatprep.mubr.msk.f32.mxu1 %vm561_vm2, %v467_v8  ;;  %v678_v19 = vld [vmem:[%s1428_s29 + $0x18] sm:$0xff]  ;;  %v677_v21 = vld [vmem:[%s1428_s29 + $0x10] sm:$0xff]  ;;  %v676_v23 = vld [vmem:[%s1428_s29 + $0x8] sm:$0xff] }
  0x3a   : > { %1174 = vmatpush3.msra.mxu1 %v470_v7  ;;  %1180 = vmatprep.subr.mxu0 %v682_v11  ;;  %v670_v20 = vld [vmem:[%s1531_s4 + $0x18] sm:$0xff]  ;;  %v669_v22 = vld [vmem:[%s1531_s4 + $0x10] sm:$0xff]  ;;  %v668_v24 = vld [vmem:[%s1531_s4 + $0x8] sm:$0xff] }
  0x3b   : > { %1175 = vmatprep.subr.mxu1 %v469_v9  ;;  %1181 = vmatpush3.msra.mxu0 %v682_v11  ;;  %v675_v26 = vld [vmem:[%s1428_s29] sm:$0xff]  ;;  %v928_v52 = vld [vmem:[%s1438_s21 + $0x8] sm:$0xff] }
  0x3c   : > { %1176 = vmatpush3.msra.mxu1 %v469_v9  ;;  %1182 = vmatprep.subr.mxu0 %v681_v13  ;;  %v667_v27 = vld [vmem:[%s1531_s4] sm:$0xff]  ;;  %v926_v0 = vld [vmem:[#allocation2 + $0x8] sm:$0xff] }
  0x3d   : > { %1178 = vmatmul.mubr.msk.f32.vlgmr.msra.gmra.mxu1 %vm561_vm2, %v468_v10  ;;  %1204 = vmatprep.subr.mxu1 %v674_v12  ;;  %v765_v29 = vld [vmem:[%s1433_s12] sm:$0xff] }
  0x3e   : > { %1205 = vmatpush3.msra.mxu1 %v674_v12  ;;  %1183 = vmatpush3.msra.mxu0 %v681_v13  ;;  %v927_v50 = vld [vmem:[%s1438_s21] sm:$0xff] }
  0x3f   : > { %1206 = vmatprep.subr.mxu1 %v673_v14  ;;  %1184 = vmatprep.subr.mxu0 %v680_v15  ;;  %v925_v3 = vld [vmem:[#allocation2] sm:$0xff] }
  0x40   : > { %1207 = vmatpush3.msra.mxu1 %v673_v14  ;;  %1185 = vmatpush3.msra.mxu0 %v680_v15 }
  0x41   : > { %1208 = vmatprep.subr.mxu1 %v672_v16  ;;  %1186 = vmatprep.subr.mxu0 %v679_v17 }
  0x42   : > { %1209 = vmatpush3.msra.mxu1 %v672_v16  ;;  %1187 = vmatpush3.msra.mxu0 %v679_v17 }
  0x43   : > { %1210 = vmatprep.subr.mxu1 %v671_v18  ;;  %1188 = vmatprep.subr.mxu0 %v678_v19 }
  0x44   : > { %1211 = vmatpush3.msra.mxu1 %v671_v18  ;;  %1189 = vmatpush3.msra.mxu0 %v678_v19 }
  0x45   : > { %1212 = vmatprep.subr.mxu1 %v670_v20  ;;  %1190 = vmatprep.subr.mxu0 %v677_v21 }
  0x46   : > { %1213 = vmatpush3.msra.mxu1 %v670_v20  ;;  %1191 = vmatpush3.msra.mxu0 %v677_v21 }
  0x47   : > { %1214 = vmatprep.subr.mxu1 %v669_v22  ;;  %1192 = vmatprep.subr.mxu0 %v676_v23 }
  0x48   : > { %1215 = vmatpush3.msra.mxu1 %v669_v22  ;;  %1193 = vmatpush3.msra.mxu0 %v676_v23 }
  0x49   : > { %1216 = vmatprep.subr.mxu1 %v668_v24  ;;  %1194 = vmatprep.subr.mxu0 %v675_v26 }
  0x4a   : > { %1217 = vmatpush3.msra.mxu1 %v668_v24  ;;  %1195 = vmatpush3.msra.mxu0 %v675_v26 }
  0x4b   : > { %1218 = vmatprep.subr.mxu1 %v667_v27  ;;  %1199 = vmatprep.subr.mxu0 %v765_v29 }
  0x4c   : > { %1219 = vmatpush3.msra.mxu1 %v667_v27  ;;  %1260 = vset.pattern.permute.xlu1 %v1339_v51 }
  0x4d   : > { %1261 = vset.pattern.permute.xlu0 %v1339_v51  ;;  %931 = vperm.xlu1 %1260, %v927_v50  }
  0x51   : > { %936 = vperm.xlu1 %1260, %v928_v52  }
  0xc8   : > { %v932_v55 = vpop.permute.xlu1 %931 }
  0xcc   : > { %v937_v63 = vpop.permute.xlu1 %936 }
  0xf8   : > { %v1168_v25 = vpop.f32.mrf.mxu0 }
  0xf9   : > { %v560_v33 = vmul.f32 2.0, %v1168_v25 }
  0xfa   : > { %v550_v28 = vpop.f32.mrf.mxu0 }
  0xfb   : > { %v559_v31 = vmul.f32 2.0, %v550_v28 }
  0xfd   : > { %v1179_v30 = vpop.f32.mrf.mxu1 }
  0xfe   : > { %v640_v35 = vadd.f32 %v1179_v30, %v560_v33 }
  0xff   : > { %v634_v32 = vpop.f32.mrf.mxu1 }
 0x100   : > { %v635_v34 = vadd.f32 %v634_v32, %v559_v31  ;;  %v1113_v37 = vmul.f32 -1.442695, %v640_v35 }
 0x102   : > { %659 = vrot.lane.b32.xlu0 %v635_v34, %s1338_s24  ;;  %v1112_v36 = vmul.f32 -1.442695, %v635_v34 }
 0x104   : > { %1262 = vpow2.f32 %v1112_v36 }
 0x105   : > { %1264 = vpow2.f32 %v1113_v37 }
 0x106   : > { %661 = vrot.lane.b32.xlu0 %v640_v35, %s1338_s24 }
 0x111   : > { %v1263_v38 = vpop.eup %1262 }
 0x112   : > { %v649_v39 = vadd.f32 1.0, %v1263_v38  ;;  %v1265_v40 = vpop.eup %1264 }
 0x113   : > { %v650_v41 = vadd.f32 1.0, %v1265_v40 }
 0x114   : > { %1266 = vrcp.f32 %v649_v39 }
 0x115   : > { %1268 = vrcp.f32 %v650_v41 }
 0x121   : > { %v1267_v42 = vpop.eup %1266 }
 0x122   : > { %v655_v43 = vmul.f32 %v1267_v42, %v635_v34  ;;  %v1269_v44 = vpop.eup %1268 }
 0x123   : > { %v656_v47 = vmul.f32 %v1269_v44, %v640_v35 }
 0x174   : > { %v660_v45 = vpop.permute.xlu0 %659 }
 0x175   : > { %v665_v46 = vmul.f32 %v660_v45, %v655_v43 }
 0x177   : > { %1196 = vmatprep.mubr.msk.f32.mxu0 %vm683_vm3, %v665_v46  ;;  %1220 = vmatprep.mubr.msk.f32.mxu1 %vm683_vm3, %v665_v46 }
 0x178   : > { %v662_v48 = vpop.permute.xlu0 %661 }
 0x179   : > { %v666_v49 = vmul.f32 %v662_v48, %v656_v47 }
 0x17b   : > { %1197 = vmatmul.mubr.msk.f32.vlgmr.msra.gmra.mxu0 %vm683_vm3, %v666_v49  ;;  %1221 = vmatmul.mubr.msk.f32.vlgmr.msra.gmra.mxu1 %vm683_vm3, %v666_v49 }
 0x17c   : > { %1200 = vmatpush3.msra.mxu0 %v765_v29 }
 0x23b   : > { %v1198_v53 = vpop.f32.mrf.mxu0  ;;  %v1222_v56 = vpop.f32.mrf.mxu1 }
 0x23d   : > { %v756_v54 = vpop.f32.mrf.mxu0  ;;  %v916_v62 = vpop.f32.mrf.mxu1 }
 0x23e   : > { %1201 = vmatprep.mubr.msk.f32.mxu0 %vm766_vm4, %v756_v54 }
 0x23f   : > { %1202 = vmatmul.mubr.msk.f32.vlgmr.msra.gmra.mxu0 %vm766_vm4, %v1198_v53 }
 0x2ff   : > { %v1203_v57 = vpop.f32.mrf.mxu0 }
 0x300   : > { %v849_v58 = vmul.f32 2.0, %v1203_v57 }
 0x301   : > { %v839_v59 = vpop.f32.mrf.mxu0 }
 0x302   : > { %v922_v60 = vadd.f32 %v1222_v56, %v849_v58  ;;  %v848_v61 = vmul.f32 2.0, %v839_v59 }
 0x304   : > { %v940_v1 = vmul.f32 %v937_v63, %v922_v60  ;;  %v917_v2 = vadd.f32 %v916_v62, %v848_v61 }
 0x306   : > { %v942_v4 = vadd.f32 %v940_v1, %v926_v0  ;;  %v939_v5 = vmul.f32 %v932_v55, %v917_v2 }
 0x308   : > { %944 = vst.msk [vmem:[#allocation2 + $0x8] sm:$0xff] %vm561_vm2, %v942_v4  ;;  %v941_v6 = vadd.f32 %v939_v5, %v925_v3 }
 0x30a   : > { %943 = vst.msk [vmem:[#allocation2] sm:$0xff] %vm561_vm2, %v941_v6 }
 0x30b PF: > { %p1120_p12 = scmp.ne.s32.totalorder %s1326_s14, 3 }
 0x30d   : > { %948 = sbr.rel (%p1120_p12) target bundleno = 788 (0x314), region = 64 }
 0x312   : > { %v949_v7 = vld [vmem:[#allocation2] sm:$0xff]  ;;  %vm951_vm5 = vcmask 261120   ;;  %v950_v8 = vld [vmem:[#allocation2 + $0x8] sm:$0xff] }
 0x313   : > { %952 = vst.msk [vmem:[#allocation5] sm:$0xff] %vm951_vm5, %v949_v7  ;;  %953 = vst.msk [vmem:[#allocation5 + $0x8] sm:$0xff] %vm951_vm5, %v950_v8 }
 0x314 PF: > { %s1537_s29 = sadd.s32 4294967295, %s1334_s16   ;;  %s1340_s21 = smov [#allocation5]  }
 0x315   : > { %p1503_p13 = scmp.eq.s32.totalorder %s1537_s29, 3  ;;  %s963_s25 = sshll.u32 %s1340_s21, 4  ;;  %s964_s25 = int_to_ptr.vmem [resolvable:$true] %s963_s25 }
 0x316   : > { %s1282_s0 = scalar_lea.vmem %s964_s25, 256  ;;  %p1289_p3 = scmp.lt.s32.totalorder %s964_s25, %s964_s25 }
 0x317   : > { %p1283_p0 = scmp.ne.s32.totalorder %s964_s25, %s1282_s0  ;;  %p1290_p4 = scmp.lt.s32.totalorder %s1282_s0, %s1282_s0 }
 0x319   : > { %p1284_p1 = pnand %p1283_p0, %p1503_p13  ;;  %p1291_p5 = por %p1290_p4, %p1289_p3 }
 0x31b   : > { %p1285_p2 = pneg %p1284_p1 }
 0x31d   : > { %p1292_p6 = pnand %p1291_p5, %p1285_p2 }
 0x31f   : > { %1295 = shalt.err (!%p1292_p6)
}
 0x320   : > { %s1341_s14 = smov 128   ;;  %s1342_s19 = smov 8  }
 0x321   : > { %1224 = dma.vmem_to_hbm [thread:$0]  (%p1503_p13), %s964_s25, 256, %s1536_s9, [#allocation6], %s1341_s14, %s1341_s14, %s1342_s19  }
 0x322   : > { %1321 = dma.done.wait (%p1503_p13), [#allocation6], 256  }
 0x323   : > { %1323 = vsyncadd (%p1503_p13), [#allocation6], 4294967040 }
 0x324 PF: > { %s26_s16 = sadd.s32 1, %s1334_s16   ;;  %s1539_s14 = smov %s1330_s15 }
 0x325   : > { %p23_p7 = scmp.ge.s32.totalorder %s26_s16, 6   ;;  %s1540_s15 = smov %s1542_s17 }
 0x327   :  { %25 = sbr.rel (!%p23_p7) target bundleno = 17 (0x11), region = 107 }
 0x32c   :  { %979 = vsyncpa [#allocation6], 1 }
 0x32d   :  { %981 = vsyncpa [#allocation6 + $0x1], 1 }

</bundles_post_ra>
